<compile_context>
chip_gen: v7x
topology: tpu7x:2x2x1
jax: 0.10.0
libtpu: 0.0.40
codegen_flags: <defaults>
</compile_context>

<pallas_src>
import functools

import jax
import jax.numpy as jnp
import numpy as np
from jax.experimental import pallas as pl
from jax.experimental.pallas import tpu as pltpu


def _round_up(v, m):
    return ((v + m - 1) // m) * m


# --------------------------------------------------------------------------
# Shared per-tile compute: conv (+bias, ReLU) + residual + LayerNorm.
# --------------------------------------------------------------------------
def _tds_tile_compute(x_cur, halo, w, b, g, beta, *, kernel_width, dilation,
                      eps, out_dtype):
    """One (C, TT) time tile.

    x_cur: (C, TT) activation tile (x dtype: f32 or bf16)
    halo:  (C, P)  last P=(kw-1)*dilation columns of the previous tile (x dtype)
    w:     (C, kw*C) stacked block-diagonal conv weights (MXU operand dtype)
    b, g, beta: (C, 1) float32
    """
    C, TT = x_cur.shape
    P = halo.shape[1]
    cdt = w.dtype

    # Cast BEFORE building the shifted windows so the unaligned lane relayouts
    # happen in the (narrow) MXU operand dtype, not f32.
    x_c = x_cur.astype(cdt)
    h_c = halo.astype(cdt)

    # Tap k reads padded-window columns [k*dil, k*dil + TT) of [halo | x_cur].
    # Build each tap directly from the two pieces (no materialized xwin); the
    # last tap is the unshifted tile (free).
    taps = []
    for k in range(kernel_width):
        h_take = P - k * dilation                       # columns from the halo
        if h_take > 0:
            taps.append(jnp.concatenate(
                [h_c[:, k * dilation:], x_c[:, :TT - h_take]], axis=1))
        else:
            taps.append(x_c)
    x_stk = jnp.concatenate(taps, axis=0)               # (kw*C, TT)

    # Grouped causal conv as ONE MXU matmul (contraction kw*C), f32 accumulate.
    acc = jnp.dot(w, x_stk, preferred_element_type=jnp.float32)
    acc = jnp.maximum(acc + b, 0.0)                     # bias + ReLU, (C, TT)

    # Residual add in f32.
    y = acc + x_cur.astype(jnp.float32)

    # LayerNorm over C (per time step): one-pass stats, biased variance (f32).
    inv_c = 1.0 / C
    mean = jnp.sum(y, axis=0, keepdims=True) * inv_c
    var = jnp.sum(y * y, axis=0, keepdims=True) * inv_c - mean * mean
    yn = (y - mean) * jax.lax.rsqrt(var + eps)
    return (yn * g + beta).astype(out_dtype)


# --------------------------------------------------------------------------
# Kernel bodies.
# --------------------------------------------------------------------------
def _tds_kernel_carry(x_ref, w_ref, b_ref, g_ref, beta_ref, o_ref, halo_ref, *,
                      kernel_width, dilation, eps):
    """grid=(B, n_t); time axis 'arbitrary'; halo carried in VMEM scratch."""
    @pl.when(pl.program_id(1) == 0)
    def _():
        halo_ref[...] = jnp.zeros_like(halo_ref)        # causal left pad

    x_cur = x_ref[0]                                    # (C, TT)
    o_ref[0] = _tds_tile_compute(
        x_cur, halo_ref[...], w_ref[...], b_ref[...], g_ref[...], beta_ref[...],
        kernel_width=kernel_width, dilation=dilation, eps=eps,
        out_dtype=o_ref.dtype)

    # Stash the causal tail for the next time tile of this batch element.
    P = halo_ref.shape[1]
    halo_ref[...] = x_cur[:, x_cur.shape[1] - P:]


def _tds_kernel_halo_input(x_ref, halo_ref, w_ref, b_ref, g_ref, beta_ref,
                           o_ref, *, kernel_width, dilation, eps):
    """grid=(B, n_t); both axes 'parallel'; halo precomputed in the wrapper."""
    o_ref[0] = _tds_tile_compute(
        x_ref[0], halo_ref[0, 0], w_ref[...], b_ref[...], g_ref[...],
        beta_ref[...], kernel_width=kernel_width, dilation=dilation, eps=eps,
        out_dtype=o_ref.dtype)


# --------------------------------------------------------------------------
# Parameter preparation (hoisted off the per-forward hot path).
# --------------------------------------------------------------------------
def prepare_tds_block_params(conv_w, conv_b, ln_g, ln_b, *, channels, width,
                             kernel_width, compute_dtype=jnp.bfloat16):
    """conv_w: (ch, ch, 1, kw) Conv2d weight; conv_b: (ch,); ln_*: (ch*width,)."""
    C = channels * width
    eye_w = jnp.eye(width, dtype=jnp.float32)
    # w_stk[:, k*C:(k+1)*C] = kron(W[:, :, 0, k], I_width)  -> (C, kw*C)
    w_stk = jnp.concatenate(
        [jnp.kron(conv_w[:, :, 0, k].astype(jnp.float32), eye_w)
         for k in range(kernel_width)], axis=1).astype(compute_dtype)
    b_col = jnp.repeat(conv_b.astype(jnp.float32), width).reshape(C, 1)
    g_col = ln_g.reshape(C, 1).astype(jnp.float32)
    beta_col = ln_b.reshape(C, 1).astype(jnp.float32)
    return w_stk, b_col, g_col, beta_col


def _pick_t_tile(T, pad, t_tile):
    if t_tile is not None:
        assert t_tile % 128 == 0, "t_tile must be a multiple of 128 (lane-dense)"
        assert t_tile >= pad, "time tile must cover the causal receptive field"
        return t_tile
    T128 = _round_up(max(T, 1), 128)
    for cand in (2048, 1024, 512, 256, 128):            # prefer big tiles
        if cand < pad:
            continue
        # Take it if it needs no extra padding, or the sequence is long enough
        # that the <1-tile tail padding is negligible.
        if T128 % cand == 0 or T128 >= 8 * cand:
            return cand
    # Degenerate case (receptive field wider than any candidate): one tile.
    return max(T128, _round_up(max(pad, 1), 128))


# --------------------------------------------------------------------------
# Public wrapper.
# --------------------------------------------------------------------------
def tds_conv2d_block_causal(x, conv_w=None, conv_b=None, ln_g=None, ln_b=None, *,
                            channels, width, kernel_width, dilation=1, eps=1e-5,
                            t_tile=None, compute_dtype=jnp.bfloat16,
                            prepared_params=None, carry_halo=None):
    """Causal TDS conv block.  x: (B, C, T) with C == channels * width.

    Activations go through HBM in x.dtype (pass bf16 for the fast path); the
    conv accumulation, residual and LayerNorm are float32 in-kernel.
    """
    B, C, T = x.shape
    assert C == channels * width
    assert kernel_width >= 2, "kernel_width == 1 is a pointwise conv"
    pad = (kernel_width - 1) * dilation

    if prepared_params is None:
        prepared_params = prepare_tds_block_params(
            conv_w, conv_b, ln_g, ln_b, channels=channels, width=width,
            kernel_width=kernel_width, compute_dtype=compute_dtype)
    w_stk, b_col, g_col, beta_col = prepared_params
    cdt_itemsize = w_stk.dtype.itemsize
    x_itemsize = x.dtype.itemsize

    t_tile = _pick_t_tile(T, pad, t_tile)
    T_pad = _round_up(T, t_tile)
    n_t = T_pad // t_tile
    x_in = x if T_pad == T else jnp.pad(x, ((0, 0), (0, 0), (0, T_pad - T)))

    if carry_halo is None:
        # Scratch-carried halo is a strict win on single-TC parts (v5e/v6e) and
        # on v7x whenever the batch axis alone can feed both TensorCores.
        carry_halo = (B >= 2) or (n_t == 1)

    # Per-step VMEM footprint (double-buffered in/out tiles, stacked window,
    # f32 temporaries, parameters) -> right-sized scoped-VMEM request.
    step_bytes = (4 * C * t_tile * x_itemsize                  # 2x in + 2x out
                  + kernel_width * C * t_tile * cdt_itemsize   # stacked window
                  + 6 * C * t_tile * 4                         # f32 temporaries
                  + 2 * (kernel_width * C * C * cdt_itemsize + 3 * C * 128 * 4))
    vmem_limit = int(min(64 << 20, max(16 << 20, 2 * step_bytes)))

    halo_bytes = 0 if carry_halo else B * n_t * C * pad * x_itemsize
    cost = pl.CostEstimate(
        flops=2 * B * T_pad * C * C * kernel_width + 10 * B * T_pad * C,
        transcendentals=B * T_pad,                             # rsqrt per step
        bytes_accessed=2 * B * T_pad * C * x_itemsize + halo_bytes
        + w_stk.size * cdt_itemsize + 3 * C * 4)

    x_spec = pl.BlockSpec((1, C, t_tile), lambda b, j: (b, 0, j))
    w_spec = pl.BlockSpec((C, kernel_width * C), lambda b, j: (0, 0))
    col_spec = pl.BlockSpec((C, 1), lambda b, j: (0, 0))
    out_spec = pl.BlockSpec((1, C, t_tile), lambda b, j: (b, 0, j))
    out_shape = jax.ShapeDtypeStruct((B, C, T_pad), x.dtype)

    if carry_halo:
        kernel = functools.partial(_tds_kernel_carry, kernel_width=kernel_width,
                                   dilation=dilation, eps=eps)
        grid_spec = pltpu.PrefetchScalarGridSpec(
            num_scalar_prefetch=0, grid=(B, n_t),
            in_specs=[x_spec, w_spec, col_spec, col_spec, col_spec],
            out_specs=out_spec,
            scratch_shapes=[pltpu.VMEM((C, pad), x.dtype)])
        out = pl.pallas_call(
            kernel, out_shape=out_shape, grid_spec=grid_spec,
            compiler_params=pltpu.CompilerParams(
                dimension_semantics=("parallel", "arbitrary"),
                vmem_limit_bytes=vmem_limit),
            cost_estimate=cost,
        )(x_in, w_stk, b_col, g_col, beta_col)
    else:
        # Per-tile causal halo built wrapper-side (~pad/t_tile of one x pass):
        # halo[b, j] = x[b, :, j*t_tile - pad : j*t_tile], zeros for j == 0.
        xr = x_in.reshape(B, C, n_t, t_tile)
        tails = xr[:, :, :n_t - 1, t_tile - pad:]
        halo = jnp.concatenate(
            [jnp.zeros((B, C, 1, pad), x.dtype), tails], axis=2)
        halo = jnp.transpose(halo, (0, 2, 1, 3))               # (B, n_t, C, P)
        kernel = functools.partial(_tds_kernel_halo_input,
                                   kernel_width=kernel_width,
                                   dilation=dilation, eps=eps)
        grid_spec = pltpu.PrefetchScalarGridSpec(
            num_scalar_prefetch=0, grid=(B, n_t),
            in_specs=[x_spec,
                      pl.BlockSpec((1, 1, C, pad), lambda b, j: (b, j, 0, 0)),
                      w_spec, col_spec, col_spec, col_spec],
            out_specs=out_spec)
        out = pl.pallas_call(
            kernel, out_shape=out_shape, grid_spec=grid_spec,
            compiler_params=pltpu.CompilerParams(
                dimension_semantics=("parallel", "parallel"),
                vmem_limit_bytes=vmem_limit),
            cost_estimate=cost,
        )(x_in, halo, w_stk, b_col, g_col, beta_col)

    return out if T_pad == T else out[:, :, :T]


# --------------------------------------------------------------------------
# Pure-JAX reference matching the PyTorch TDSConv2dBlockCausal semantics.
# --------------------------------------------------------------------------
def reference_forward(x, conv_w, conv_b, ln_g, ln_b, *,
                      channels, width, kernel_width, dilation, eps=1e-5):
    B, C, T = x.shape
    xr = x.reshape(B, channels, width, T)
    pad = (kernel_width - 1) * dilation
    xp = jnp.pad(xr, ((0, 0), (0, 0), (0, 0), (pad, 0)))
    out = jnp.zeros((B, channels, width, T), jnp.float32)
    for k in range(kernel_width):
        xs = xp[..., k * dilation: k * dilation + T]
        out = out + jnp.einsum('oi,biwt->bowt', conv_w[:, :, 0, k], xs)
    out = out + conv_b[None, :, None, None]
    out = jnp.maximum(out, 0.0)
    y = out.reshape(B, C, T) + x
    mean = jnp.mean(y, axis=1, keepdims=True)
    var = jnp.mean((y - mean) ** 2, axis=1, keepdims=True)
    yn = (y - mean) * jax.lax.rsqrt(var + eps)
    return yn * ln_g[None, :, None] + ln_b[None, :, None]


if __name__ == "__main__":
    # Small shapes consistent with the encoder (num_features = 64 -> C = 64),
    # T chosen so the tiled halo path is actually exercised (n_t = 2).
    B, channels, width, T = 2, 8, 8, 256
    kernel_width, dilation = 3, 2                   # causal pad = 4
    C = channels * width

    key = jax.random.PRNGKey(0)
    kx, kw_, kb, kg, kbt = jax.random.split(key, 5)
    x = jax.random.normal(kx, (B, C, T), dtype=jnp.float32)
    conv_w = jax.random.normal(kw_, (channels, channels, 1, kernel_width),
                               dtype=jnp.float32) * 0.2
    conv_b = jax.random.normal(kb, (channels,), dtype=jnp.float32) * 0.1
    ln_g = 1.0 + 0.1 * jax.random.normal(kg, (C,), dtype=jnp.float32)
    ln_b = 0.1 * jax.random.normal(kbt, (C,), dtype=jnp.float32)

    ref = jax.block_until_ready(reference_forward(
        x, conv_w, conv_b, ln_g, ln_b, channels=channels, width=width,
        kernel_width=kernel_width, dilation=dilation))

    # Prepared params (hoisted off the hot path), f32 and bf16 variants.
    params_f32 = prepare_tds_block_params(
        conv_w, conv_b, ln_g, ln_b, channels=channels, width=width,
        kernel_width=kernel_width, compute_dtype=jnp.float32)
    params_bf16 = prepare_tds_block_params(
        conv_w, conv_b, ln_g, ln_b, channels=channels, width=width,
        kernel_width=kernel_width, compute_dtype=jnp.bfloat16)

    # 1) f32 activations / f32 MXU operands, scratch-carried halo (default).
    out_carry = jax.block_until_ready(tds_conv2d_block_causal(
        x, channels=channels, width=width, kernel_width=kernel_width,
        dilation=dilation, t_tile=128, compute_dtype=jnp.float32,
        prepared_params=params_f32, carry_halo=True))
    np.testing.assert_allclose(np.asarray(out_carry), np.asarray(ref),
                               rtol=1e-4, atol=1e-4)

    # 2) Same, halo-as-input variant (fully 'parallel' grid, e.g. v7x B==1).
    out_halo = jax.block_until_ready(tds_conv2d_block_causal(
        x, channels=channels, width=width, kernel_width=kernel_width,
        dilation=dilation, t_tile=128, compute_dtype=jnp.float32,
        prepared_params=params_f32, carry_halo=False))
    np.testing.assert_allclose(np.asarray(out_halo), np.asarray(ref),
                               rtol=1e-4, atol=1e-4)

    # 3) bf16 activations through HBM + bf16 MXU operands (recommended fast
    #    path); accumulation / residual / LayerNorm stay f32 in-kernel.
    x_bf16 = x.astype(jnp.bfloat16)
    ref_bf16_in = jax.block_until_ready(reference_forward(
        x_bf16.astype(jnp.float32), conv_w, conv_b, ln_g, ln_b,
        channels=channels, width=width, kernel_width=kernel_width,
        dilation=dilation))
    out_bf16 = jax.block_until_ready(tds_conv2d_block_causal(
        x_bf16, channels=channels, width=width, kernel_width=kernel_width,
        dilation=dilation, t_tile=128, compute_dtype=jnp.bfloat16,
        prepared_params=params_bf16))
    assert out_bf16.dtype == jnp.bfloat16
    np.testing.assert_allclose(np.asarray(out_bf16.astype(jnp.float32)),
                               np.asarray(ref_bf16_in), rtol=3e-2, atol=3e-2)

    # 4) Ragged T (not a multiple of 128): pad-and-slice fallback path.
    T2 = 200
    x2 = x[:, :, :T2]
    ref2 = jax.block_until_ready(reference_forward(
        x2, conv_w, conv_b, ln_g, ln_b, channels=channels, width=width,
        kernel_width=kernel_width, dilation=dilation))
    out2 = jax.block_until_ready(tds_conv2d_block_causal(
        x2, channels=channels, width=width, kernel_width=kernel_width,
        dilation=dilation, compute_dtype=jnp.float32,
        prepared_params=params_f32))
    np.testing.assert_allclose(np.asarray(out2), np.asarray(ref2),
                               rtol=1e-4, atol=1e-4)

    print("KERNEL_OK")
</pallas_src>

<mosaic_0001>
module attributes {stable_mosaic.version = 11 : i64} {
  func.func @_tds_kernel_carry(%arg0: i32, %arg1: i32, %arg2: memref<1x64x128xf32, #tpu.memory_space<vmem>>, %arg3: memref<64x192xf32, #tpu.memory_space<vmem>>, %arg4: memref<64x1xf32, #tpu.memory_space<vmem>>, %arg5: memref<64x1xf32, #tpu.memory_space<vmem>>, %arg6: memref<64x1xf32, #tpu.memory_space<vmem>>, %arg7: memref<1x64x128xf32, #tpu.memory_space<vmem>>, %arg8: memref<64x4xf32, #tpu.memory_space<vmem>>) attributes {dimension_semantics = [#tpu.dimension_semantics<parallel>, #tpu.dimension_semantics<arbitrary>], iteration_bounds = array<i64: 2, 2>, scalar_prefetch = 0 : i64, scratch_operands = 1 : i64, tpu.core_type = #tpu.core_type<tc>, window_params = [{transform_indices = @transform_0, window_bounds = array<i64: 1, 64, 128>}, {pipeline_mode = #tpu.pipeline_mode<synchronous>, transform_indices = @transform_1, window_bounds = array<i64: 64, 192>}, {pipeline_mode = #tpu.pipeline_mode<synchronous>, transform_indices = @transform_2, window_bounds = array<i64: 64, 1>}, {pipeline_mode = #tpu.pipeline_mode<synchronous>, transform_indices = @transform_3, window_bounds = array<i64: 64, 1>}, {pipeline_mode = #tpu.pipeline_mode<synchronous>, transform_indices = @transform_4, window_bounds = array<i64: 64, 1>}, {transform_indices = @transform_5, window_bounds = array<i64: 1, 64, 128>}]} {
    %c0_i32 = arith.constant 0 : i32
    %0 = arith.cmpi eq, %arg1, %c0_i32 : i32
    %1 = arith.extui %0 : i1 to i32
    %c0_i32_0 = arith.constant 0 : i32
    %2 = arith.cmpi ne, %1, %c0_i32_0 : i32
    scf.if %2 {
      %cst_24 = arith.constant 0.000000e+00 : f32
      %49 = vector.broadcast %cst_24 : f32 to vector<64x4xf32>
      %c0_25 = arith.constant 0 : index
      %c0_26 = arith.constant 0 : index
      %50 = vector.load %arg8[%c0_25, %c0_26] : memref<64x4xf32, #tpu.memory_space<vmem>>, vector<64x4xf32>
      tpu.vector_store %arg8[%c0_25, %c0_26], %49 {strides = array<i32>} : memref<64x4xf32, #tpu.memory_space<vmem>>, vector<64x4xf32>,
    } else {
    }
    %c0 = arith.constant 0 : index
    %c0_1 = arith.constant 0 : index
    %c0_2 = arith.constant 0 : index
    %3 = vector.load %arg2[%c0, %c0_1, %c0_2] : memref<1x64x128xf32, #tpu.memory_space<vmem>>, vector<1x64x128xf32>
    %4 = vector.shape_cast %3 : vector<1x64x128xf32> to vector<64x128xf32>
    %c0_3 = arith.constant 0 : index
    %c0_4 = arith.constant 0 : index
    %5 = vector.load %arg8[%c0_3, %c0_4] : memref<64x4xf32, #tpu.memory_space<vmem>>, vector<64x4xf32>
    %c0_5 = arith.constant 0 : index
    %c0_6 = arith.constant 0 : index
    %6 = vector.load %arg3[%c0_5, %c0_6] : memref<64x192xf32, #tpu.memory_space<vmem>>, vector<64x192xf32>
    %c0_7 = arith.constant 0 : index
    %c0_8 = arith.constant 0 : index
    %7 = vector.load %arg4[%c0_7, %c0_8] : memref<64x1xf32, #tpu.memory_space<vmem>>, vector<64x1xf32>
    %c0_9 = arith.constant 0 : index
    %c0_10 = arith.constant 0 : index
    %8 = vector.load %arg5[%c0_9, %c0_10] : memref<64x1xf32, #tpu.memory_space<vmem>>, vector<64x1xf32>
    %c0_11 = arith.constant 0 : index
    %c0_12 = arith.constant 0 : index
    %9 = vector.load %arg6[%c0_11, %c0_12] : memref<64x1xf32, #tpu.memory_space<vmem>>, vector<64x1xf32>
    %10 = vector.extract_strided_slice %4 {offsets = [0, 0], sizes = [64, 124], strides = [1, 1]} : vector<64x128xf32> to vector<64x124xf32>
    %11 = tpu.concatenate %5, %10 in 1 : vector<64x4xf32>, vector<64x124xf32> -> vector<64x128xf32>
    %12 = vector.extract_strided_slice %5 {offsets = [0, 2], sizes = [64, 2], strides = [1, 1]} : vector<64x4xf32> to vector<64x2xf32>
    %13 = vector.extract_strided_slice %4 {offsets = [0, 0], sizes = [64, 126], strides = [1, 1]} : vector<64x128xf32> to vector<64x126xf32>
    %14 = tpu.concatenate %12, %13 in 1 : vector<64x2xf32>, vector<64x126xf32> -> vector<64x128xf32>
    %15 = tpu.concatenate %11, %14, %4 in 0 : vector<64x128xf32>, vector<64x128xf32>, vector<64x128xf32> -> vector<192x128xf32>
    %cst = arith.constant dense<0.000000e+00> : vector<64x128xf32>
    %16 = tpu.matmul %6, %15, %cst {dimension_numbers = #tpu.dot_dimension_numbers<[1], [0], [0], [1], [0, 0, 1, 1], [], []>} : vector<64x192xf32>, vector<192x128xf32>, vector<64x128xf32> -> vector<64x128xf32>
    %17 = vector.broadcast %7 : vector<64x1xf32> to vector<64x128xf32>
    %18 = arith.addf %16, %17 : vector<64x128xf32>
    %cst_13 = arith.constant 0.000000e+00 : f32
    %19 = vector.broadcast %cst_13 : f32 to vector<64x128xf32>
    %20 = arith.maximumf %18, %19 : vector<64x128xf32>
    %21 = arith.addf %20, %4 : vector<64x128xf32>
    %cst_14 = arith.constant dense<0.000000e+00> : vector<128xf32>
    %22 = vector.multi_reduction <add>, %21, %cst_14 [0] : vector<64x128xf32> to vector<128xf32>
    %23 = vector.shape_cast %22 : vector<128xf32> to vector<1x128xf32>
    %cst_15 = arith.constant 1.562500e-02 : f32
    %24 = vector.broadcast %cst_15 : f32 to vector<1x128xf32>
    %25 = arith.mulf %23, %24 : vector<1x128xf32>
    %26 = arith.mulf %21, %21 : vector<64x128xf32>
    %cst_16 = arith.constant dense<0.000000e+00> : vector<128xf32>
    %27 = vector.multi_reduction <add>, %26, %cst_16 [0] : vector<64x128xf32> to vector<128xf32>
    %28 = vector.shape_cast %27 : vector<128xf32> to vector<1x128xf32>
    %cst_17 = arith.constant 1.562500e-02 : f32
    %29 = vector.broadcast %cst_17 : f32 to vector<1x128xf32>
    %30 = arith.mulf %28, %29 : vector<1x128xf32>
    %31 = arith.mulf %25, %25 : vector<1x128xf32>
    %32 = arith.subf %30, %31 : vector<1x128xf32>
    %33 = vector.broadcast %25 : vector<1x128xf32> to vector<64x128xf32>
    %34 = arith.subf %21, %33 : vector<64x128xf32>
    %cst_18 = arith.constant 9.99999974E-6 : f32
    %35 = vector.broadcast %cst_18 : f32 to vector<1x128xf32>
    %36 = arith.addf %32, %35 : vector<1x128xf32>
    %37 = math.rsqrt %36 : vector<1x128xf32>
    %38 = vector.broadcast %37 : vector<1x128xf32> to vector<64x128xf32>
    %39 = arith.mulf %34, %38 : vector<64x128xf32>
    %40 = vector.broadcast %8 : vector<64x1xf32> to vector<64x128xf32>
    %41 = arith.mulf %39, %40 : vector<64x128xf32>
    %42 = vector.broadcast %9 : vector<64x1xf32> to vector<64x128xf32>
    %43 = arith.addf %41, %42 : vector<64x128xf32>
    %c0_19 = arith.constant 0 : index
    %c0_20 = arith.constant 0 : index
    %c0_21 = arith.constant 0 : index
    %44 = vector.load %arg7[%c0_19, %c0_20, %c0_21] : memref<1x64x128xf32, #tpu.memory_space<vmem>>, vector<1x64x128xf32>
    %45 = vector.shape_cast %44 : vector<1x64x128xf32> to vector<64x128xf32>
    %46 = vector.shape_cast %43 : vector<64x128xf32> to vector<1x64x128xf32>
    tpu.vector_store %arg7[%c0_19, %c0_20, %c0_21], %46 {strides = array<i32>} : memref<1x64x128xf32, #tpu.memory_space<vmem>>, vector<1x64x128xf32>,
    %47 = vector.extract_strided_slice %4 {offsets = [0, 124], sizes = [64, 4], strides = [1, 1]} : vector<64x128xf32> to vector<64x4xf32>
    %c0_22 = arith.constant 0 : index
    %c0_23 = arith.constant 0 : index
    %48 = vector.load %arg8[%c0_22, %c0_23] : memref<64x4xf32, #tpu.memory_space<vmem>>, vector<64x4xf32>
    tpu.vector_store %arg8[%c0_22, %c0_23], %47 {strides = array<i32>} : memref<64x4xf32, #tpu.memory_space<vmem>>, vector<64x4xf32>,
    return
  }
  func.func @transform_0(%arg0: i32, %arg1: i32) -> (i32, i32, i32) {
    %c0_i32 = arith.constant 0 : i32
    %c0_i32_0 = arith.constant 0 : i32
    return %arg0, %c0_i32, %arg1 : i32, i32, i32
  }
  func.func @transform_1(%arg0: i32, %arg1: i32) -> (i32, i32) {
    %c0_i32 = arith.constant 0 : i32
    %c0_i32_0 = arith.constant 0 : i32
    %c0_i32_1 = arith.constant 0 : i32
    return %c0_i32, %c0_i32_0 : i32, i32
  }
  func.func @transform_2(%arg0: i32, %arg1: i32) -> (i32, i32) {
    %c0_i32 = arith.constant 0 : i32
    %c0_i32_0 = arith.constant 0 : i32
    %c0_i32_1 = arith.constant 0 : i32
    return %c0_i32, %c0_i32_0 : i32, i32
  }
  func.func @transform_3(%arg0: i32, %arg1: i32) -> (i32, i32) {
    %c0_i32 = arith.constant 0 : i32
    %c0_i32_0 = arith.constant 0 : i32
    %c0_i32_1 = arith.constant 0 : i32
    return %c0_i32, %c0_i32_0 : i32, i32
  }
  func.func @transform_4(%arg0: i32, %arg1: i32) -> (i32, i32) {
    %c0_i32 = arith.constant 0 : i32
    %c0_i32_0 = arith.constant 0 : i32
    %c0_i32_1 = arith.constant 0 : i32
    return %c0_i32, %c0_i32_0 : i32, i32
  }
  func.func @transform_5(%arg0: i32, %arg1: i32) -> (i32, i32, i32) {
    %c0_i32 = arith.constant 0 : i32
    %c0_i32_0 = arith.constant 0 : i32
    return %arg0, %c0_i32, %arg1 : i32, i32, i32
  }
}

</mosaic_0001>

<bundles_post_ra>
// kernel: tpu_custom_call.1
= control target key start
LH: loop header
LB: loop body
LE: loop exit
PB: predicated region body
PF: predicated region fallthrough
CT: control target
= control target key end

     0   :  { %10 = vsyncpa [#allocation4], 0  ;;  %s1805_s0 = inlined_call_operand.hbm [shape: f32[2,64,256], index: 0, kind: input, shape index: {}]   ;;  %s1806_s1 = inlined_call_operand.vmem [shape: f32[64,192], index: 1, kind: input, shape index: {}]   ;;  %s1807_s2 = inlined_call_operand.vmem [shape: f32[64,1], index: 2, kind: input, shape index: {}]   ;;  %s1808_s3 = inlined_call_operand.vmem [shape: f32[64,1], index: 3, kind: input, shape index: {}]   ;;  %s1809_s4 = inlined_call_operand.vmem [shape: f32[64,1], index: 4, kind: input, shape index: {}]   ;;  %s1810_s5 = inlined_call_operand.hbm [shape: f32[2,64,256], index: 5, kind: output, shape index: {}]  }
   0x1   :  { %12 = vsyncpa [#allocation4 + $0x1], 0 }
   0x2   :  { %13 = vsyncpa [#allocation5], 0 }
   0x3   :  { %15 = vsyncpa [#allocation5 + $0x1], 0  ;;  %s1284_s18 = smov 0   ;;  %s1286_s19 = smov 0  }
   0x4   :  { %s1288_s20 = smov 0   ;;  %s1290_s21 = smov 0  }
   0x5   :  { %s1292_s22 = smov 0   ;;  %s1294_s23 = smov 0  }
   0x6   :  { %s1296_s24 = smov 0   ;;  %s1298_s25 = smov 0  }
   0x7 LB: > { %1815 = sst [smem:[#allocation9_spill]] %s1210_s18  ;;  %s892_s26 = sadd.s32 4294967295, %s1238_s25   ;;  %s1238_s25 = sphi %s1298_s25, %s21_s25   ;;  %s1234_s24 = sphi %s1296_s24, %s1834_s24   ;;  %s1230_s23 = sphi %s1294_s23, %s1833_s23   ;;  %s1226_s22 = sphi %s1292_s22, %s1832_s22   ;;  %s1222_s21 = sphi %s1290_s21, %s1831_s21   ;;  %s1218_s20 = sphi %s1288_s20, %s1830_s20   ;;  %s1214_s19 = sphi %s1286_s19, %s1829_s19   ;;  %s1210_s18 = sphi %s1284_s18, %s1828_s18  }
   0x8   : > { %s893_s27 = sadd.s32 4294967294, %s1238_s25   ;;  %s30_s28 = sadd.s32 1, %s1230_s23 }
   0x9   : > { %s33_s29 = sadd.s32 1, %s1234_s24  ;;  %p31_p0 = scmp.ge.s32.totalorder %s30_s28, 2 }
   0xa   : > { %s42_s30 = sadd.s32 1, %s1218_s20  ;;  %p49_p1 = scmp.ne.s32.totalorder %s1218_s20, %s1214_s19 }
   0xb   : > { %p50_p2 = scmp.eq.s32.totalorder %s1238_s25, 0  ;;  %s1836_s28 = smov (%p31_p0, %s30_s28), 0 }
   0xc   : > { %1816 = sst [smem:[#allocation10_spill]] %s1836_s28  ;;  %s1838_s29 = smov (!%p31_p0, %s33_s29), %s1234_s24 }
   0xd   : > { %s38_s6 = ssub.s32 %s1230_s23, %s1836_s28  ;;  %p1337_p3 = por %p50_p2, %p49_p1 }
   0xe   : > { %p35_p4 = scmp.ge.s32.totalorder %s1838_s29, 2  ;;  %p55_p5 = scmp.ne.s32.totalorder %s1214_s19, %s1210_s18 }
   0xf   : > { %p56_p6 = scmp.eq.s32.totalorder %s892_s26, 0  ;;  %p165_p7 = scmp.eq.s32.totalorder %s892_s26, 3 }
  0x10   : > { %s1840_s29 = smov (%p35_p4, %s1838_s29), 0  ;;  %p171_p10 = scmp.eq.s32.totalorder %s893_s27, 3 }
  0x11   : > { %1818 = sst [smem:[#allocation11_spill]] %s1840_s29  ;;  %p1345_p8 = por %p56_p6, %p55_p5 }
  0x12   : > { %p1349_p9 = por %p165_p7, %p49_p1  ;;  %s37_s10 = ssub.s32 %s1234_s24, %s1840_s29 }
  0x13   : > { %s39_s11 = sor.u32 %s38_s6, %s37_s10  ;;  %p1355_p12 = por %p171_p10, %p55_p5 }
  0x14   : > { %s1820_s9 = scalar_select %p1349_p9, 1, 0 }
  0x15   : > { %p40_p11 = scmp.eq.s32.totalorder %s39_s11, 0  ;;  %p988_p13 = scmp.lt.s32.totalorder %s1238_s25, 4 }
  0x16   : > { %s1821_s12 = scalar_select %p1355_p12, 1, 0 }
  0x17   : > { %s203_s13 = sand.u32 1, %s1218_s20   ;;  %s897_s16 = sshll.u32 %s1234_s24, 4 }
  0x18   : > { %s1362_s14 = scalar_select %p40_p11, %s1218_s20, %s42_s30  }
  0x19   : > { %s896_s15 = sshll.u32 %s203_s13, 6  ;;  %s212_s17 = sadd.s32 %s1230_s23, %s897_s16 }
  0x1a   : > { %s207_s26 = scalar_lea.vmem [#allocation3], %s896_s15  ;;  %s898_s18 = sshll.u32 %s212_s17, 7 }
  0x1b   : > { %s215_s28 = sshll.u32 %s207_s26, 4  ;;  %s1371_s6 = scalar_lea.hbm %s1805_s0, %s898_s18  ;;  %s1366_s28 = int_to_ptr.vmem [resolvable:$true] %s215_s28 }
  0x1c   : > { %p1375_p0 = pnand %p988_p13, %p1337_p3  ;;  %s1379_s10 = scalar_lea.sflag [#allocation4], %s203_s13 }
  0x1d   : > { %s1110_s11 = scalar_lea.hbm %s1371_s6, 1024  ;;  %s1115_s7 = scalar_lea.hbm %s1805_s0, 4096 }
  0x1e   : > { %p1111_p1 = scmp.ne.s32.totalorder %s1371_s6, %s1110_s11  ;;  %p1112_p2 = pneg %p1375_p0 }
  0x1f   : > { %p1116_p3 = scmp.lt.u32.totalorder %s1371_s6, %s1805_s0  ;;  %p1117_p6 = scmp.lt.u32.totalorder %s1115_s7, %s1110_s11 }
  0x20   : > { %p1113_p4 = pnand %p1112_p2, %p1111_p1  ;;  %p1119_p10 = scmp.lt.u32.totalorder %s1110_s11, %s1371_s6 }
  0x21   : > { %p1118_p7 = por %p1117_p6, %p1116_p3 }
  0x22   : > { %p1114_p5 = pneg %p1113_p4 }
  0x23   : > { %p1120_p11 = por %p1119_p10, %p1118_p7 }
  0x25   : > { %p1121_p13 = pnand %p1120_p11, %p1114_p5 }
  0x27   : > { %1124 = shalt.err (!%p1121_p13)
}
  0x28   : > { %s1125_s13 = scalar_lea.vmem %s1366_s28, 1024  ;;  %s1240_s17 = smov [#allocation3]  }
  0x29   : > { %p1126_p1 = scmp.ne.s32.totalorder %s1366_s28, %s1125_s13  ;;  %s1130_s26 = sshll.u32 %s1240_s17, 4  ;;  %s1131_s26 = int_to_ptr.vmem [resolvable:$false] %s1130_s26 }
  0x2a   : > { %s1132_s27 = scalar_lea.vmem %s1131_s26, 2048  ;;  %p1133_p9 = scmp.lt.s32.totalorder %s1366_s28, %s1131_s26 }
  0x2b   : > { %p1128_p4 = pnand %p1126_p1, %p1112_p2  ;;  %p1134_p3 = scmp.lt.s32.totalorder %s1132_s27, %s1125_s13 }
  0x2d   : > { %p1129_p12 = pneg %p1128_p4  ;;  %p1135_p6 = por %p1134_p3, %p1133_p9 }
  0x2f   : > { %p1136_p7 = pnand %p1135_p6, %p1129_p12 }
  0x31   : > { %1139 = shalt.err (!%p1136_p7)
}
  0x32   : > { %s1241_s11 = smov 256   ;;  %s1242_s18 = smov 128  }
  0x33   : > { %s1243_s29 = smov 8   ;;  %p899_p2 = scmp.ge.s32.totalorder %s1238_s25, 1 }
  0x34   : > { %983 = dma.hbm_to_vmem [thread:$0]  (!%p1375_p0), %s1371_s6, 1024, %s1366_s28, %s1379_s10, %s1241_s11, %s1242_s18, %s1243_s29  }
  0x35   : > { %p223_p5 = scmp.lt.s32.totalorder %s1238_s25, 5 }
  0x37   : > { %p224_p10 = pnand %p899_p2, %p223_p5 }
  0x38   : > { %s1410_s7 = sand.u32 (!%p224_p10), 1, %s1214_s19  }
  0x39   : > { %227 = sbr.rel (%p224_p10) target bundleno = 540 (0x21c), region = 40  ;;  %s900_s15 = sshll.u32 (!%p224_p10), %s1410_s7, 6 }
  0x3a   : > { %s230_s16 = scalar_lea.sflag (!%p224_p10), [#allocation4], %s1410_s7  ;;  %s1414_s13 = scalar_lea.vmem (!%p224_p10), [#allocation3], %s900_s15 }
  0x40   : > { %1201 = dma.done.wait (%p1345_p8), %s230_s16, 1024  }
  0x41   : > { %1203 = vsyncadd (%p1345_p8), %s230_s16, 4294966272  ;;  %s1420_s28 = scalar_lea.vmem [#allocation6], %s900_s15  ;;  %p902_p9 = scmp.ne.s32.totalorder %s1222_s21, 0 }
  0x42   : > { %vm264_vm0 = vcmask (!%p902_p9), 31744   ;;  %v1244_v0 = vmov (!%p902_p9), 0.0  }
  0x43   : > { %263 = sbr.rel (%p902_p9) target bundleno = 74 (0x4a), region = 48  ;;  %265 = vst.msk [vmem:[#allocation2] sm:$0xff] (!%p902_p9), %vm264_vm0, %v1244_v0  ;;  %266 = vst.msk [vmem:[#allocation2 + $0x8] sm:$0xff] (!%p902_p9), %vm264_vm0, %v1244_v0 }
  0x44   : > { %267 = vst.msk [vmem:[#allocation2 + $0x10] sm:$0xff] (!%p902_p9), %vm264_vm0, %v1244_v0  ;;  %268 = vst.msk [vmem:[#allocation2 + $0x18] sm:$0xff] (!%p902_p9), %vm264_vm0, %v1244_v0 }
  0x45   : > { %269 = vst.msk [vmem:[#allocation2 + $0x20] sm:$0xff] (!%p902_p9), %vm264_vm0, %v1244_v0  ;;  %270 = vst.msk [vmem:[#allocation2 + $0x28] sm:$0xff] (!%p902_p9), %vm264_vm0, %v1244_v0 }
  0x46   : > { %271 = vst.msk [vmem:[#allocation2 + $0x30] sm:$0xff] (!%p902_p9), %vm264_vm0, %v1244_v0  ;;  %272 = vst.msk [vmem:[#allocation2 + $0x38] sm:$0xff] (!%p902_p9), %vm264_vm0, %v1244_v0 }
  0x4a PF: > { %v1424_v1 = vld [vmem:[%s1414_s13 + $0x10] sm:$0xff]  ;;  %v1427_v2 = vld [vmem:[%s1414_s13] sm:$0xff]  ;;  %s1245_s8 = smov 4   ;;  %v1432_v3 = vld [vmem:[%s1414_s13 + $0x18] sm:$0xff]  ;;  %v1246_v5 = vmov 0.0|0.0   ;;  %s1247_s6 = smov 2  }
  0x4b   : > { %341 = vrot.lane.b32.xlu1 %v1424_v1, %s1245_s8  ;;  %337 = vrot.lane.b32.xlu0 %v1427_v2, %s1245_s8  ;;  %v1435_v4 = vld [vmem:[%s1414_s13 + $0x8] sm:$0xff]  ;;  %v1445_v7 = vld [vmem:[%s1414_s13 + $0x20] sm:$0xff]  ;;  %v1465_v14 = vld [vmem:[#allocation2 + $0x10] sm:$0xff]  ;;  %s1248_s30 = smov 126   ;;  %v1081_v16 = vpack.i.bf16 %v1432_v3, %v1424_v1  ;;  %vm475_vm1 = vcmask 523264   ;;  %v1249_v30 = vmov 0  }
  0x4c   : > { %916 = vmatprep.subr.bf16.mxu0 %v1246_v5  ;;  %952 = vmatprep.subr.bf16.mxu1 %v1246_v5  ;;  %v1442_v6 = vld [vmem:[%s1414_s13 + $0x28] sm:$0xff]  ;;  %v1449_v8 = vld [vmem:[#allocation2] sm:$0xff]  ;;  %v1452_v9 = vld [vmem:[%s1414_s13 + $0x38] sm:$0xff]  ;;  %v1071_v12 = vpack.i.bf16 %v1435_v4, %v1427_v2  ;;  %vm361_vm2 = vcmask 31744   ;;  %vm426_vm3 = vcmask 15360   ;;  %s912_s26 = sshll.u32 %s1226_s22, 4 }
  0x4d   : > { %v1455_v10 = vld [vmem:[%s1414_s13 + $0x30] sm:$0xff]  ;;  %v1457_v11 = vld [vmem:[#allocation2 + $0x8] sm:$0xff]  ;;  %v1467_v15 = vld [vmem:[#allocation2 + $0x18] sm:$0xff]  ;;  %v1091_v20 = vpack.i.bf16 %v1442_v6, %v1445_v7  ;;  %1107 = vset.pattern.permute.xlu1 %v1249_v30  ;;  %1106 = vset.pattern.permute.xlu0 %v1249_v30  ;;  %s801_s27 = sadd.s32 %s1222_s21, %s912_s26  ;;  %s804_s18 = sshll.u32 %s1420_s28, 4  ;;  %s1743_s18 = int_to_ptr.vmem [resolvable:$true] %s804_s18 }
  0x4e   : > { %v1066_v13 = vpack.i.bf16 %v1457_v11, %v1449_v8  ;;  %v1076_v17 = vpack.i.bf16 %v1467_v15, %v1465_v14  ;;  %v1473_v18 = vld [vmem:[#allocation2 + $0x20] sm:$0xff]  ;;  %v1475_v19 = vld [vmem:[#allocation2 + $0x28] sm:$0xff]  ;;  %v1481_v22 = vld [vmem:[#allocation2 + $0x30] sm:$0xff]  ;;  %v1101_v24 = vpack.i.bf16 %v1452_v9, %v1455_v10  ;;  %s913_s11 = sshll.u32 %s801_s27, 7  ;;  %s790_s15 = scalar_lea.sflag [#allocation5], %s1410_s7 }
  0x4f   : > { %343 = vrot.lane.b32.xlu1 %v1432_v3, %s1245_s8  ;;  %339 = vrot.lane.b32.xlu0 %v1435_v4, %s1245_s8  ;;  %v1086_v21 = vpack.i.bf16 %v1475_v19, %v1473_v18  ;;  %v1483_v23 = vld [vmem:[#allocation2 + $0x38] sm:$0xff]  ;;  %v290_v26 = vld [vmem:[%s1806_s1 + $0x8] sm:$0xff]  ;;  %v305_v29 = vld [vmem:[%s1807_s2] sm:$0xff]  ;;  %s1741_s29 = scalar_lea.hbm %s1810_s5, %s913_s11  ;;  %s1140_s16 = scalar_lea.vmem %s1743_s18, 1024 }
  0x50   : > { %v1096_v25 = vpack.i.bf16 %v1483_v23, %v1481_v22  ;;  %v298_v27 = vld [vmem:[%s1806_s1 + $0x48] sm:$0xff]  ;;  %903 = vmatprep.mubr.msk.f32.mxu0 %vm475_vm1, %v290_v26  ;;  %v307_v31 = vld [vmem:[%s1807_s2 + $0x10] sm:$0xff]  ;;  %v308_v32 = vld [vmem:[%s1807_s2 + $0x18] sm:$0xff]  ;;  %p1141_p8 = scmp.ne.s32.totalorder %s1743_s18, %s1140_s16  ;;  %p1823_p12 = scmp.ne.s32.totalorder %s1820_s9, 0 }
  0x51   : > { %907 = vmatprep.mubr.msk.f32.mxu1 %vm475_vm1, %v298_v27  ;;  %v306_v28 = vld [vmem:[%s1807_s2 + $0x8] sm:$0xff]  ;;  %v309_v33 = vld [vmem:[%s1807_s2 + $0x20] sm:$0xff]  ;;  %v311_v35 = vld [vmem:[%s1807_s2 + $0x30] sm:$0xff]  ;;  %s1250_s13 = smov [#allocation6]  }
  0x52   : > { %v310_v34 = vld [vmem:[%s1807_s2 + $0x28] sm:$0xff]  ;;  %v312_v36 = vld [vmem:[%s1807_s2 + $0x38] sm:$0xff]  ;;  %v313_v37 = vld [vmem:[%s1808_s3] sm:$0xff]  ;;  %p1142_p0 = pnand %p1141_p8, %p1823_p12 }
  0x53   : > { %347 = vrot.lane.b32.xlu1 %v1442_v6, %s1245_s8  ;;  %345 = vrot.lane.b32.xlu0 %v1445_v7, %s1245_s8  ;;  %v314_v38 = vld [vmem:[%s1808_s3 + $0x8] sm:$0xff]  ;;  %v315_v39 = vld [vmem:[%s1808_s3 + $0x10] sm:$0xff] }
  0x54   : > { %v316_v40 = vld [vmem:[%s1808_s3 + $0x18] sm:$0xff]  ;;  %v317_v41 = vld [vmem:[%s1808_s3 + $0x20] sm:$0xff]  ;;  %v318_v42 = vld [vmem:[%s1808_s3 + $0x28] sm:$0xff]  ;;  %p1143_p11 = pneg %p1142_p0 }
  0x55   : > { %v319_v43 = vld [vmem:[%s1808_s3 + $0x30] sm:$0xff]  ;;  %v320_v44 = vld [vmem:[%s1808_s3 + $0x38] sm:$0xff]  ;;  %v321_v45 = vld [vmem:[%s1809_s4] sm:$0xff] }
  0x56   : > { %v322_v46 = vld [vmem:[%s1809_s4 + $0x8] sm:$0xff]  ;;  %v323_v47 = vld [vmem:[%s1809_s4 + $0x10] sm:$0xff]  ;;  %v324_v48 = vld [vmem:[%s1809_s4 + $0x18] sm:$0xff] }
  0x57   : > { %351 = vrot.lane.b32.xlu1 %v1452_v9, %s1245_s8  ;;  %349 = vrot.lane.b32.xlu0 %v1455_v10, %s1245_s8  ;;  %v325_v49 = vld [vmem:[%s1809_s4 + $0x20] sm:$0xff]  ;;  %v326_v50 = vld [vmem:[%s1809_s4 + $0x28] sm:$0xff]  ;;  %s1144_s8 = sshll.u32 %s1250_s13, 4  ;;  %s1145_s8 = int_to_ptr.vmem [resolvable:$false] %s1144_s8 }
  0x58   : > { %v327_v51 = vld [vmem:[%s1809_s4 + $0x30] sm:$0xff]  ;;  %v328_v52 = vld [vmem:[%s1809_s4 + $0x38] sm:$0xff]  ;;  %p1147_p13 = scmp.lt.s32.totalorder %s1743_s18, %s1145_s8 }
  0x5b   : > { %1072 = vrot.lane.b32.xlu1 %v1071_v12, %s1247_s6  ;;  %1067 = vrot.lane.b32.xlu0 %v1066_v13, %s1248_s30 }
  0x5f   : > { %1082 = vrot.lane.b32.xlu1 %v1081_v16, %s1247_s6  ;;  %1077 = vrot.lane.b32.xlu0 %v1076_v17, %s1248_s30 }
  0x63   : > { %1092 = vrot.lane.b32.xlu1 %v1091_v20, %s1247_s6  ;;  %1087 = vrot.lane.b32.xlu0 %v1086_v21, %s1248_s30 }
  0x67   : > { %1102 = vrot.lane.b32.xlu1 %v1101_v24, %s1247_s6  ;;  %1097 = vrot.lane.b32.xlu0 %v1096_v25, %s1248_s30  ;;  %s1146_s6 = scalar_lea.vmem %s1145_s8, 2048 }
  0x68   : > { %p1148_p1 = scmp.lt.s32.totalorder %s1146_s6, %s1140_s16 }
  0x6a   : > { %p1149_p4 = por %p1148_p1, %p1147_p13 }
  0x6b   : > { %442 = vperm.xlu1 %1107, %v306_v28   ;;  %437 = vperm.xlu0 %1106, %v305_v29  }
  0x6c   : > { %p1150_p3 = pnand %p1149_p4, %p1143_p11 }
  0x6f   : > { %447 = vperm.xlu1 %1107, %v307_v31   ;;  %452 = vperm.xlu0 %1106, %v308_v32  }
  0x73   : > { %457 = vperm.xlu1 %1107, %v309_v33   ;;  %462 = vperm.xlu0 %1106, %v310_v34  }
  0x77   : > { %467 = vperm.xlu1 %1107, %v311_v35   ;;  %472 = vperm.xlu0 %1106, %v312_v36  }
  0x7b   : > { %679 = vperm.xlu1 %1107, %v313_v37   ;;  %684 = vperm.xlu0 %1106, %v314_v38  }
  0x7f   : > { %689 = vperm.xlu1 %1107, %v315_v39   ;;  %694 = vperm.xlu0 %1106, %v316_v40  }
  0x83   : > { %699 = vperm.xlu1 %1107, %v317_v41   ;;  %704 = vperm.xlu0 %1106, %v318_v42  }
  0x87   : > { %709 = vperm.xlu1 %1107, %v319_v43   ;;  %714 = vperm.xlu0 %1106, %v320_v44  }
  0x8b   : > { %727 = vperm.xlu1 %1107, %v321_v45   ;;  %732 = vperm.xlu0 %1106, %v322_v46  }
  0x8f   : > { %737 = vperm.xlu1 %1107, %v323_v47   ;;  %742 = vperm.xlu0 %1106, %v324_v48  }
  0x93   : > { %747 = vperm.xlu1 %1107, %v325_v49   ;;  %752 = vperm.xlu0 %1106, %v326_v50  }
  0x97   : > { %757 = vperm.xlu1 %1107, %v327_v51   ;;  %762 = vperm.xlu0 %1106, %v328_v52  }
  0xbd   : > { %v342_v53 = vpop.permute.xlu1 %341  ;;  %v338_v54 = vpop.permute.xlu0 %337 }
  0xbe   : > { %783 = vst.msk [vmem:[#allocation2 + $0x10] sm:$0xff] %vm361_vm2, %v342_v53  ;;  %781 = vst.msk [vmem:[#allocation2] sm:$0xff] %vm361_vm2, %v338_v54  ;;  %v362_v57 = vsel %vm361_vm2, %v1449_v8, %v338_v54  ;;  %v364_v63 = vsel %vm361_vm2, %v1465_v14, %v342_v53  ;;  %v941_v54 = vpack.c.bf16 %v1435_v4, %v1427_v2 }
  0xc1   : > { %v344_v55 = vpop.permute.xlu1 %343  ;;  %v340_v56 = vpop.permute.xlu0 %339 }
  0xc2   : > { %784 = vst.msk [vmem:[#allocation2 + $0x18] sm:$0xff] %vm361_vm2, %v344_v55  ;;  %v363_v58 = vsel %vm361_vm2, %v1457_v11, %v340_v56  ;;  %782 = vst.msk [vmem:[#allocation2 + $0x8] sm:$0xff] %vm361_vm2, %v340_v56  ;;  %v365_v60 = vsel %vm361_vm2, %v1467_v15, %v344_v55  ;;  %v944_v55 = vpack.c.bf16 %v1432_v3, %v1424_v1 }
  0xc3   : > { %v917_v59 = vpack.c.bf16 %v363_v58, %v362_v57  ;;  %v920_v0 = vpack.c.bf16 %v365_v60, %v364_v63  ;;  %v947_v56 = vpack.c.bf16 %v1442_v6, %v1445_v7  ;;  %v950_v57 = vpack.c.bf16 %v1452_v9, %v1455_v10  ;;  %v289_v58 = vld [vmem:[%s1806_s1] sm:$0xff]  ;;  %v292_v60 = vld [vmem:[%s1806_s1 + $0x18] sm:$0xff]  ;;  %v294_v63 = vld [vmem:[%s1806_s1 + $0x28] sm:$0xff] }
  0xc5   : > { %918 = vmatpush1.bf16.msra.mxu0 %v917_v59  ;;  %964 = vmatpush1.bf16.msra.mxu1 %v917_v59  ;;  %v348_v61 = vpop.permute.xlu1 %347  ;;  %v346_v62 = vpop.permute.xlu0 %345  ;;  %v297_v59 = vld [vmem:[%s1806_s1 + $0x40] sm:$0xff] }
  0xc6   : > { %786 = vst.msk [vmem:[#allocation2 + $0x28] sm:$0xff] %vm361_vm2, %v348_v61  ;;  %785 = vst.msk [vmem:[#allocation2 + $0x20] sm:$0xff] %vm361_vm2, %v346_v62  ;;  %919 = vmatprep.subr.bf16.mxu0 %v1246_v5  ;;  %953 = vmatprep.subr.bf16.mxu1 %v1246_v5  ;;  %v367_v8 = vsel %vm361_vm2, %v1475_v19, %v348_v61  ;;  %v366_v11 = vsel %vm361_vm2, %v1473_v18, %v346_v62  ;;  %v300_v61 = vld [vmem:[%s1806_s1 + $0x58] sm:$0xff]  ;;  %v299_v62 = vld [vmem:[%s1806_s1 + $0x50] sm:$0xff] }
  0xc7   : > { %v923_v14 = vpack.c.bf16 %v367_v8, %v366_v11  ;;  %v293_v8 = vld [vmem:[%s1806_s1 + $0x20] sm:$0xff] }
  0xc8   : > { %v301_v11 = vld [vmem:[%s1806_s1 + $0x60] sm:$0xff] }
  0xc9   : > { %921 = vmatpush1.bf16.msra.mxu0 %v920_v0  ;;  %965 = vmatpush1.bf16.msra.mxu1 %v920_v0  ;;  %v352_v12 = vpop.permute.xlu1 %351  ;;  %v350_v13 = vpop.permute.xlu0 %349  ;;  %v302_v0 = vld [vmem:[%s1806_s1 + $0x68] sm:$0xff] }
  0xca   : > { %788 = vst.msk [vmem:[#allocation2 + $0x38] sm:$0xff] %vm361_vm2, %v352_v12  ;;  %787 = vst.msk [vmem:[#allocation2 + $0x30] sm:$0xff] %vm361_vm2, %v350_v13  ;;  %922 = vmatprep.subr.bf16.mxu0 %v1246_v5  ;;  %954 = vmatprep.subr.bf16.mxu1 %v1246_v5  ;;  %v369_v15 = vsel %vm361_vm2, %v1483_v23, %v352_v12  ;;  %v368_v16 = vsel %vm361_vm2, %v1481_v22, %v350_v13  ;;  %v296_v12 = vld [vmem:[%s1806_s1 + $0x38] sm:$0xff] }
  0xcb   : > { %v926_v25 = vpack.c.bf16 %v369_v15, %v368_v16  ;;  %v304_v13 = vld [vmem:[%s1806_s1 + $0x78] sm:$0xff]  ;;  %v303_v15 = vld [vmem:[%s1806_s1 + $0x70] sm:$0xff] }
  0xcd   : > { %924 = vmatpush1.bf16.msra.mxu0 %v923_v14  ;;  %966 = vmatpush1.bf16.msra.mxu1 %v923_v14  ;;  %v1073_v17 = vpop.permute.xlu1 %1072  ;;  %v1068_v18 = vpop.permute.xlu0 %1067  ;;  %v295_v14 = vld [vmem:[%s1806_s1 + $0x30] sm:$0xff] }
  0xce   : > { %v1075_v19 = vunpack.i.h.bf16 %v1073_v17  ;;  %v1074_v20 = vunpack.i.l.bf16 %v1073_v17  ;;  %v1070_v21 = vunpack.i.h.bf16 %v1068_v18  ;;  %v1069_v24 = vunpack.i.l.bf16 %v1068_v18  ;;  %925 = vmatprep.subr.bf16.mxu0 %v1246_v5  ;;  %955 = vmatprep.subr.bf16.mxu1 %v1246_v5 }
  0xd0   : > { %v427_v26 = vsel %vm426_vm3, %v1069_v24, %v1074_v20  ;;  %v428_v23 = vsel %vm426_vm3, %v1070_v21, %v1075_v19 }
  0xd1   : > { %927 = vmatpush1.bf16.msra.mxu0 %v926_v25  ;;  %967 = vmatpush1.bf16.msra.mxu1 %v926_v25  ;;  %v1083_v22 = vpop.permute.xlu1 %1082  ;;  %v1078_v27 = vpop.permute.xlu0 %1077  ;;  %v929_v28 = vpack.c.bf16 %v428_v23, %v427_v26 }
  0xd2   : > { %v1085_v29 = vunpack.i.h.bf16 %v1083_v22  ;;  %v1084_v30 = vunpack.i.l.bf16 %v1083_v22  ;;  %v1080_v31 = vunpack.i.h.bf16 %v1078_v27  ;;  %v1079_v32 = vunpack.i.l.bf16 %v1078_v27  ;;  %928 = vmatprep.subr.bf16.mxu0 %v1246_v5  ;;  %956 = vmatprep.subr.bf16.mxu1 %v1246_v5 }
  0xd4   : > { %v429_v33 = vsel %vm426_vm3, %v1079_v32, %v1084_v30  ;;  %v430_v34 = vsel %vm426_vm3, %v1080_v31, %v1085_v29 }
  0xd5   : > { %930 = vmatpush1.bf16.msra.mxu0 %v929_v28  ;;  %968 = vmatpush1.bf16.msra.mxu1 %v929_v28  ;;  %v1093_v35 = vpop.permute.xlu1 %1092  ;;  %v1088_v36 = vpop.permute.xlu0 %1087  ;;  %v932_v37 = vpack.c.bf16 %v430_v34, %v429_v33 }
  0xd6   : > { %v1095_v38 = vunpack.i.h.bf16 %v1093_v35  ;;  %v1094_v39 = vunpack.i.l.bf16 %v1093_v35  ;;  %v1090_v40 = vunpack.i.h.bf16 %v1088_v36  ;;  %v1089_v41 = vunpack.i.l.bf16 %v1088_v36  ;;  %931 = vmatprep.subr.bf16.mxu0 %v1246_v5  ;;  %957 = vmatprep.subr.bf16.mxu1 %v1246_v5 }
  0xd8   : > { %v431_v42 = vsel %vm426_vm3, %v1089_v41, %v1094_v39  ;;  %v432_v43 = vsel %vm426_vm3, %v1090_v40, %v1095_v38 }
  0xd9   : > { %933 = vmatpush1.bf16.msra.mxu0 %v932_v37  ;;  %969 = vmatpush1.bf16.msra.mxu1 %v932_v37  ;;  %v1103_v44 = vpop.permute.xlu1 %1102  ;;  %v1098_v45 = vpop.permute.xlu0 %1097  ;;  %v935_v46 = vpack.c.bf16 %v432_v43, %v431_v42 }
  0xda   : > { %v1105_v47 = vunpack.i.h.bf16 %v1103_v44  ;;  %v1104_v48 = vunpack.i.l.bf16 %v1103_v44  ;;  %v1100_v49 = vunpack.i.h.bf16 %v1098_v45  ;;  %v1099_v50 = vunpack.i.l.bf16 %v1098_v45  ;;  %934 = vmatprep.subr.bf16.mxu0 %v1246_v5  ;;  %958 = vmatprep.subr.bf16.mxu1 %v1246_v5 }
  0xdc   : > { %v433_v51 = vsel %vm426_vm3, %v1099_v50, %v1104_v48  ;;  %v434_v52 = vsel %vm426_vm3, %v1100_v49, %v1105_v47 }
  0xdd   : > { %936 = vmatpush1.bf16.msra.mxu0 %v935_v46  ;;  %970 = vmatpush1.bf16.msra.mxu1 %v935_v46  ;;  %v938_v53 = vpack.c.bf16 %v434_v52, %v433_v51 }
  0xde   : > { %937 = vmatprep.subr.bf16.mxu0 %v1246_v5  ;;  %959 = vmatprep.subr.bf16.mxu1 %v1246_v5 }
  0xe1   : > { %939 = vmatpush1.bf16.msra.mxu0 %v938_v53  ;;  %971 = vmatpush1.bf16.msra.mxu1 %v938_v53 }
  0xe2   : > { %940 = vmatprep.subr.bf16.mxu0 %v1246_v5  ;;  %960 = vmatprep.subr.bf16.mxu1 %v1246_v5 }
  0xe5   : > { %942 = vmatpush1.bf16.msra.mxu0 %v941_v54  ;;  %972 = vmatpush1.bf16.msra.mxu1 %v941_v54 }
  0xe6   : > { %943 = vmatprep.subr.bf16.mxu0 %v1246_v5  ;;  %961 = vmatprep.subr.bf16.mxu1 %v1246_v5 }
  0xe9   : > { %945 = vmatpush1.bf16.msra.mxu0 %v944_v55  ;;  %973 = vmatpush1.bf16.msra.mxu1 %v944_v55 }
  0xea   : > { %946 = vmatprep.subr.bf16.mxu0 %v1246_v5  ;;  %962 = vmatprep.subr.bf16.mxu1 %v1246_v5  ;;  %v443_v16 = vpop.permute.xlu1 %442  ;;  %v438_v17 = vpop.permute.xlu0 %437 }
  0xed   : > { %948 = vmatpush1.bf16.msra.mxu0 %v947_v56  ;;  %974 = vmatpush1.bf16.msra.mxu1 %v947_v56 }
  0xee   : > { %949 = vmatprep.subr.bf16.mxu0 %v1246_v5  ;;  %963 = vmatprep.subr.bf16.mxu1 %v1246_v5  ;;  %v291_v5 = vld [vmem:[%s1806_s1 + $0x10] sm:$0xff]  ;;  %v448_v18 = vpop.permute.xlu1 %447  ;;  %v453_v19 = vpop.permute.xlu0 %452 }
  0xf1   : > { %951 = vmatpush1.bf16.msra.mxu0 %v950_v57  ;;  %975 = vmatpush1.bf16.msra.mxu1 %v950_v57 }
  0xf2   : > { %v458_v23 = vpop.permute.xlu1 %457  ;;  %v463_v32 = vpop.permute.xlu0 %462 }
  0xf4   : > { %565 = vmatmul.mubr.f32.vlgmr.msra.gmra.mrb[0].mxu0 %v289_v58  ;;  %585 = vmatmul.mubr.f32.vlgmr.msra.gmra.mrb[0].mxu1 %v297_v59 }
  0xf5   : > { %904 = vmatprep.mubr.msk.f32.mxu0 %vm475_vm1, %v292_v60  ;;  %908 = vmatprep.mubr.msk.f32.mxu1 %vm475_vm1, %v300_v61 }
  0xf6   : > { %v468_v43 = vpop.permute.xlu1 %467  ;;  %v473_v55 = vpop.permute.xlu0 %472 }
  0xf8   : > { %570 = vmatmul.mubr.f32.gmra.mrb[2].mxu0 %v291_v5  ;;  %590 = vmatmul.mubr.f32.gmra.mrb[2].mxu1 %v299_v62 }
  0xf9   : > { %905 = vmatprep.mubr.msk.f32.mxu0 %vm475_vm1, %v294_v63  ;;  %909 = vmatprep.mubr.msk.f32.mxu1 %vm475_vm1, %v302_v0 }
  0xfc   : > { %575 = vmatmul.mubr.f32.gmra.mrb[4].mxu0 %v293_v8  ;;  %595 = vmatmul.mubr.f32.gmra.mrb[4].mxu1 %v301_v11 }
  0xfd   : > { %906 = vmatprep.mubr.msk.f32.mxu0 %vm475_vm1, %v296_v12  ;;  %910 = vmatprep.mubr.msk.f32.mxu1 %vm475_vm1, %v304_v13  ;;  %v1709_v12 = vpop.permute.xlu0 %684 }
 0x100   : > { %580 = vmatmul.mubr.f32.gmra.mrb[6].mxu0 %v295_v14  ;;  %600 = vmatmul.mubr.f32.gmra.mrb[6].mxu1 %v303_v15  ;;  %v1717_v15 = vpop.permute.xlu1 %679 }
 0x1c7   : > { %v566_v20 = vpop.f32.mrb[0].mxu0  ;;  %v586_v21 = vpop.f32.mrb[0].mxu1 }
 0x1c8   : > { %v567_v24 = vadd.f32 %v566_v20, %v438_v17  ;;  %v568_v25 = vpop.f32.mrb[1].mxu0  ;;  %v588_v26 = vpop.f32.mrb[1].mxu1  ;;  %v587_v35 = vadd.f32 %v586_v21, %v458_v23 }
 0x1c9   : > { %v695_v21 = vpop.permute.xlu0 %694  ;;  %v690_v23 = vpop.permute.xlu1 %689 }
 0x1ca   : > { %v605_v22 = vmax.f32 %v567_v24, 0.0  ;;  %v609_v47 = vmax.f32 %v587_v35, 0.0 }
 0x1cb   : > { %v571_v27 = vpop.f32.mrb[2].mxu0  ;;  %v591_v28 = vpop.f32.mrb[2].mxu1 }
 0x1cc   : > { %v572_v29 = vadd.f32 %v571_v27, %v443_v16  ;;  %v573_v30 = vpop.f32.mrb[3].mxu0  ;;  %v593_v31 = vpop.f32.mrb[3].mxu1  ;;  %v1680_v33 = vadd.f32 %v605_v22, %v1427_v2  ;;  %v592_v42 = vadd.f32 %v591_v28, %v463_v32  ;;  %v1698_v61 = vadd.f32 %v609_v47, %v1445_v7 }
 0x1cd   : > { %v705_v30 = vpop.permute.xlu0 %704  ;;  %v700_v32 = vpop.permute.xlu1 %699 }
 0x1ce   : > { %v606_v34 = vmax.f32 %v572_v29, 0.0  ;;  %v635_v44 = vmul.f32 %v1680_v33, %v1680_v33  ;;  %v610_v56 = vmax.f32 %v592_v42, 0.0  ;;  %v639_v7 = vmul.f32 %v1698_v61, %v1698_v61 }
 0x1cf   : > { %v576_v36 = vpop.f32.mrb[4].mxu0  ;;  %v596_v37 = vpop.f32.mrb[4].mxu1 }
 0x1d0   : > { %v1683_v38 = vadd.f32 %v606_v34, %v1435_v4  ;;  %v577_v39 = vadd.f32 %v576_v36, %v448_v18  ;;  %v578_v40 = vpop.f32.mrb[5].mxu0  ;;  %v598_v41 = vpop.f32.mrb[5].mxu1  ;;  %v597_v51 = vadd.f32 %v596_v37, %v468_v43  ;;  %v1704_v63 = vadd.f32 %v610_v56, %v1442_v6 }
 0x1d1   : > { %v710_v42 = vpop.permute.xlu1 %709 }
 0x1d2   : > { %v621_v45 = vadd.f32 %v1683_v38, %v1680_v33  ;;  %v636_v2 = vmul.f32 %v1683_v38, %v1683_v38  ;;  %v607_v46 = vmax.f32 %v577_v39, 0.0  ;;  %v611_v62 = vmax.f32 %v597_v51, 0.0  ;;  %v715_v39 = vpop.permute.xlu0 %714 }
 0x1d3   : > { %v581_v48 = vpop.f32.mrb[6].mxu0  ;;  %v601_v49 = vpop.f32.mrb[6].mxu1  ;;  %v640_v6 = vmul.f32 %v1704_v63, %v1704_v63 }
 0x1d4   : > { %v643_v4 = vadd.f32 %v636_v2, %v635_v44  ;;  %v1692_v50 = vadd.f32 %v607_v46, %v1424_v1  ;;  %v582_v52 = vadd.f32 %v581_v48, %v453_v19  ;;  %v583_v53 = vpop.f32.mrb[7].mxu0  ;;  %v603_v54 = vpop.f32.mrb[7].mxu1  ;;  %v602_v60 = vadd.f32 %v601_v49, %v473_v55 }
 0x1d5   : > { %v1714_v13 = vadd.f32 %v611_v62, %v1455_v10  ;;  %v728_v56 = vpop.permute.xlu1 %727 }
 0x1d6   : > { %v622_v57 = vadd.f32 %v621_v45, %v1692_v50  ;;  %v637_v58 = vmul.f32 %v1692_v50, %v1692_v50  ;;  %v608_v59 = vmax.f32 %v582_v52, 0.0  ;;  %v612_v11 = vmax.f32 %v602_v60, 0.0  ;;  %v733_v52 = vpop.permute.xlu0 %732 }
 0x1d7   : > { %v641_v19 = vmul.f32 %v1714_v13, %v1714_v13 }
 0x1d8   : > { %v644_v5 = vadd.f32 %v643_v4, %v637_v58  ;;  %v1701_v1 = vadd.f32 %v608_v59, %v1432_v3  ;;  %v620_v17 = vadd.f32 %v612_v11, %v1452_v9 }
 0x1da   : > { %v623_v0 = vadd.f32 %v622_v57, %v1701_v1  ;;  %v638_v8 = vmul.f32 %v1701_v1, %v1701_v1  ;;  %v642_v25 = vmul.f32 %v620_v17, %v620_v17 }
 0x1dc   : > { %v624_v3 = vadd.f32 %v623_v0, %v1698_v61  ;;  %v645_v14 = vadd.f32 %v644_v5, %v638_v8 }
 0x1de   : > { %v646_v16 = vadd.f32 %v645_v14, %v639_v7  ;;  %v625_v18 = vadd.f32 %v624_v3, %v1704_v63 }
 0x1e0   : > { %v626_v20 = vadd.f32 %v625_v18, %v1714_v13  ;;  %v647_v10 = vadd.f32 %v646_v16, %v640_v6 }
 0x1e2   : > { %v627_v24 = vadd.f32 %v626_v20, %v620_v17  ;;  %v648_v26 = vadd.f32 %v647_v10, %v641_v19 }
 0x1e4   : > { %v628_v22 = vrot.slane %v627_v24, 4  ;;  %v649_v27 = vadd.f32 %v648_v26, %v642_v25 }
 0x1e6   : > { %v629_v28 = vadd.f32 %v628_v22, %v627_v24  ;;  %v650_v29 = vrot.slane %v649_v27, 4 }
 0x1e8   : > { %v630_v31 = vrot.slane %v629_v28, 2  ;;  %v651_v9 = vadd.f32 %v650_v29, %v649_v27 }
 0x1ea   : > { %v631_v34 = vadd.f32 %v630_v31, %v629_v28  ;;  %v652_v35 = vrot.slane %v651_v9, 2 }
 0x1ec   : > { %v632_v36 = vrot.slane %v631_v34, 1  ;;  %v653_v37 = vadd.f32 %v652_v35, %v651_v9 }
 0x1ee   : > { %v633_v40 = vadd.f32 %v632_v36, %v631_v34  ;;  %v654_v41 = vrot.slane %v653_v37, 1 }
 0x1f0   : > { %v634_v43 = vmul.f32 0.015625, %v633_v40  ;;  %v655_v44 = vadd.f32 %v654_v41, %v653_v37 }
 0x1f2   : > { %v656_v45 = vmul.f32 0.015625, %v655_v44  ;;  %v657_v2 = vmul.f32 %v634_v43, %v634_v43  ;;  %v659_v46 = vsub.f32 %v1680_v33, %v634_v43  ;;  %v660_v47 = vsub.f32 %v1683_v38, %v634_v43  ;;  %v743_v33 = vpop.permute.xlu0 %742  ;;  %v738_v38 = vpop.permute.xlu1 %737 }
 0x1f3   : > { %v661_v48 = vsub.f32 %v1692_v50, %v634_v43  ;;  %v662_v49 = vsub.f32 %v1701_v1, %v634_v43  ;;  %v663_v4 = vsub.f32 %v1698_v61, %v634_v43  ;;  %v664_v51 = vsub.f32 %v1704_v63, %v634_v43 }
 0x1f4   : > { %v658_v53 = vsub.f32 %v656_v45, %v657_v2  ;;  %v665_v54 = vsub.f32 %v1714_v13, %v634_v43  ;;  %v666_v55 = vsub.f32 %v620_v17, %v634_v43 }
 0x1f6   : > { %v667_v57 = vadd.f32 1e-05, %v658_v53  ;;  %v753_v58 = vpop.permute.xlu0 %752  ;;  %v748_v50 = vpop.permute.xlu1 %747 }
 0x1f8   : > { %1108 = vrsqrt.f32 %v667_v57 }
 0x1fa   : > { %v763_v14 = vpop.permute.xlu0 %762 }
 0x202   : > { %v1109_v59 = vpop.eup %1108 }
 0x203   : > { %v676_v60 = vmul.f32 %v1109_v59, %v666_v55  ;;  %v669_v61 = vmul.f32 %v1109_v59, %v659_v46  ;;  %v670_v5 = vmul.f32 %v1109_v59, %v660_v47  ;;  %v671_v62 = vmul.f32 %v1109_v59, %v661_v48 }
 0x204   : > { %v672_v1 = vmul.f32 %v1109_v59, %v662_v49  ;;  %v673_v63 = vmul.f32 %v1109_v59, %v663_v4  ;;  %v674_v0 = vmul.f32 %v1109_v59, %v664_v51  ;;  %v675_v8 = vmul.f32 %v1109_v59, %v665_v54 }
 0x205   : > { %v724_v11 = vmul.f32 %v715_v39, %v676_v60  ;;  %v717_v7 = vmul.f32 %v1717_v15, %v669_v61  ;;  %v718_v13 = vmul.f32 %v1709_v12, %v670_v5  ;;  %v719_v3 = vmul.f32 %v690_v23, %v671_v62  ;;  %v758_v15 = vpop.permute.xlu1 %757 }
 0x206   : > { %v720_v6 = vmul.f32 %v695_v21, %v672_v1  ;;  %v721_v16 = vmul.f32 %v700_v32, %v673_v63  ;;  %v722_v17 = vmul.f32 %v705_v30, %v674_v0  ;;  %v723_v18 = vmul.f32 %v710_v42, %v675_v8 }
 0x207   : > { %v772_v12 = vadd.f32 %v763_v14, %v724_v11  ;;  %v765_v19 = vadd.f32 %v728_v56, %v717_v7  ;;  %v766_v20 = vadd.f32 %v733_v52, %v718_v13  ;;  %v767_v10 = vadd.f32 %v738_v38, %v719_v3 }
 0x208   : > { %v768_v21 = vadd.f32 %v743_v33, %v720_v6  ;;  %v769_v24 = vadd.f32 %v748_v50, %v721_v16  ;;  %v770_v25 = vadd.f32 %v753_v58, %v722_v17  ;;  %v771_v26 = vadd.f32 %v758_v15, %v723_v18 }
 0x209   : > { %780 = vst [vmem:[%s1420_s28 + $0x38] sm:$0xff] %v772_v12  ;;  %773 = vst [vmem:[%s1420_s28] sm:$0xff] %v765_v19 }
 0x20a   : > { %774 = vst [vmem:[%s1420_s28 + $0x8] sm:$0xff] %v766_v20  ;;  %775 = vst [vmem:[%s1420_s28 + $0x10] sm:$0xff] %v767_v10 }
 0x20b   : > { %776 = vst [vmem:[%s1420_s28 + $0x18] sm:$0xff] %v768_v21  ;;  %777 = vst [vmem:[%s1420_s28 + $0x20] sm:$0xff] %v769_v24 }
 0x20c   : > { %778 = vst [vmem:[%s1420_s28 + $0x28] sm:$0xff] %v770_v25  ;;  %779 = vst [vmem:[%s1420_s28 + $0x30] sm:$0xff] %v771_v26 }
 0x20d   : > { %1153 = shalt.err (!%p1150_p3)
}
 0x20e   : > { %s1154_s28 = scalar_lea.hbm %s1741_s29, 1024  ;;  %s1158_s17 = scalar_lea.hbm %s1810_s5, 4096 }
 0x20f   : > { %p1155_p6 = scmp.ne.s32.totalorder %s1741_s29, %s1154_s28  ;;  %p1159_p5 = scmp.lt.u32.totalorder %s1741_s29, %s1810_s5 }
 0x210   : > { %p1160_p10 = scmp.lt.u32.totalorder %s1158_s17, %s1154_s28  ;;  %p1162_p8 = scmp.lt.u32.totalorder %s1154_s28, %s1741_s29 }
 0x211   : > { %p1156_p7 = pnand %p1155_p6, %p1823_p12 }
 0x212   : > { %p1161_p9 = por %p1160_p10, %p1159_p5 }
 0x213   : > { %p1157_p2 = pneg %p1156_p7 }
 0x214   : > { %p1163_p0 = por %p1162_p8, %p1161_p9 }
 0x216   : > { %p1164_p11 = pnand %p1163_p0, %p1157_p2 }
 0x218   : > { %1167 = shalt.err (!%p1164_p11)
}
 0x219   : > { %s1251_s11 = smov 128   ;;  %s1252_s21 = smov 256  }
 0x21a   : > { %s1253_s22 = smov 8  }
 0x21b   : > { %978 = dma.vmem_to_hbm [thread:$0]  (%p1823_p12), %s1743_s18, 1024, %s1741_s29, %s790_s15, %s1251_s11, %s1252_s21, %s1253_s22  }
 0x21c PF: > { %s1824_s16 = sld [smem:[#allocation9_spill]]  ;;  %p989_p13 = scmp.ge.s32.totalorder %s1238_s25, 2 }
 0x21d   : > { %p1825_p1 = scmp.ne.s32.totalorder %s1821_s12, 0 }
 0x21f   : > { %p985_p4 = pnand %p989_p13, %p1825_p1 }
 0x222   : > { %s819_s13 = sand.u32 1, %s1824_s16  }
 0x223   : > { %s820_s8 = scalar_lea.sflag [#allocation5], %s819_s13 }
 0x224   : > { %1205 = dma.done.wait (!%p985_p4), %s820_s8, 1024  }
 0x225   : > { %1207 = vsyncadd (!%p985_p4), %s820_s8, 4294966272  ;;  %s21_s25 = sadd.s32 1, %s1238_s25   ;;  %s1826_s9 = sld [smem:[#allocation10_spill]] }
 0x226   : > { %p18_p3 = scmp.ge.s32.totalorder %s21_s25, 6   ;;  %s1827_s7 = sld [smem:[#allocation11_spill]] }
 0x227   : > { %s1828_s18 = smov %s1214_s19  ;;  %s1829_s19 = smov %s1218_s20 }
 0x228   : > { %s1830_s20 = smov %s1362_s14  ;;  %s1831_s21 = smov %s1230_s23 }
 0x229   : > { %s1832_s22 = smov %s1234_s24  ;;  %20 = sbr.rel (!%p18_p3) target bundleno = 7 (0x7), region = 89 }
 0x22b   : > { %s1833_s23 = smov %s1826_s9 }
 0x22c   : > { %s1834_s24 = smov %s1827_s7 }
 0x230   :  { %825 = vsyncpa [#allocation4], 1 }
 0x231   :  { %827 = vsyncpa [#allocation4 + $0x1], 1 }
 0x232   :  { %828 = vsyncpa [#allocation5], 1 }
 0x233   :  { %830 = vsyncpa [#allocation5 + $0x1], 1 }

</bundles_post_ra>
